<compile_context>
chip_gen: v6e
topology: v6e:2x2x1
jax: 0.10.0
libtpu: 0.0.40
codegen_flags: <defaults>
</compile_context>

<pallas_src>
import functools

import jax
import jax.numpy as jnp
from jax.experimental import pallas as pl
from jax.experimental.pallas import tpu as pltpu


def _mlp_kernel(x_ref, w1_ref, w2_ref, w3_ref, w4_ref, w5_ref, out_ref, *,
                epilogue_dtype):
    """Activations are (features, TM): batch on the 128-lane axis.

    x_ref carries a trailing ones-row; hidden weights are augmented
    [[W, b], [0, 1]] so the ones-row is preserved and every bias comes out of
    the MXU f32 accumulator for free.
    """
    h = x_ref[...]                                           # (in_dim+1, TM) f32
    for w_ref in (w1_ref, w2_ref, w3_ref, w4_ref):
        w = w_ref[...]
        h = jnp.dot(w, h.astype(w.dtype),
                    preferred_element_type=jnp.float32)      # (H+1, TM), f32 acc
        if epilogue_dtype != jnp.float32:
            h = h.astype(epilogue_dtype)                     # bf16 ReLU (v6e/v7x)
        h = jnp.maximum(h, 0.0)
    w5 = w5_ref[...]
    out = jnp.dot(w5, h.astype(w5.dtype),
                  preferred_element_type=jnp.float32)        # (out_dim, TM)
    out_ref[...] = out.astype(out_ref.dtype)


def prepare_params(params, *, use_bf16=True):
    """One-time parameter prep (hoisted out of the per-call forward).

    params: 5 x (W, b) in PyTorch layout, W=(out, in), b=(out,).
    Returns 5 augmented weights:
      hidden layers: [[W, b], [0...0, 1]]  -> (out+1, in+1)  (preserves ones-row)
      output layer:  [W, b]                -> (out,   in+1)
    """
    def aug(w, b, keep_ones_row):
        w = jnp.asarray(w, jnp.float32)
        b = jnp.asarray(b, jnp.float32).reshape(-1, 1)
        wa = jnp.concatenate([w, b], axis=1)
        if keep_ones_row:
            ones_row = jnp.zeros((1, wa.shape[1]), jnp.float32).at[0, -1].set(1.0)
            wa = jnp.concatenate([wa, ones_row], axis=0)
        return wa.astype(jnp.bfloat16 if use_bf16 else jnp.float32)

    (w1, b1), (w2, b2), (w3, b3), (w4, b4), (w5, b5) = params
    return (aug(w1, b1, True), aug(w2, b2, True), aug(w3, b3, True),
            aug(w4, b4, True), aug(w5, b5, False))


@functools.partial(jax.jit, static_argnames=("tile_m", "bf16_epilogue"))
def context_to_sol_forward(t, f, context, prepared_params, *,
                           tile_m=1024, bf16_epilogue=False):
    """Forward pass of ContextToSol.  Returns (B, output_dim) f32.

    prepared_params: output of prepare_params().  t/f/context: (B, *)."""
    t = jnp.asarray(t, jnp.float32)
    f = jnp.asarray(f, jnp.float32)
    context = jnp.asarray(context, jnp.float32)

    B = t.shape[0]
    w1a, w2a, w3a, w4a, w5a = prepared_params
    in_dim_aug = w1a.shape[1]                       # input_dim + 1 (ones row)
    out_dim = w5a.shape[0]
    assert in_dim_aug == t.shape[1] + f.shape[1] + context.shape[1] + 1

    # Single fused concat + ones column + transpose -> (in_dim+1, B), batch on
    # lanes.  Everything here fuses under jit; no standalone pad pass.
    xT = jnp.concatenate(
        [t, f, context, jnp.ones((B, 1), jnp.float32)], axis=1).T

    # Batch tile: large to amortize per-step overhead, but capped so the grid
    # keeps >=2 steps when B allows (v7x shards the "parallel" axis on 2 TCs).
    tm_cap = ((pl.cdiv(B, 2) + 127) // 128) * 128
    tm = max(128, min(tile_m, tm_cap))
    grid = (pl.cdiv(B, tm),)                        # Pallas masks the last partial block

    def resident(a):
        # Constant block index => weights stay resident in VMEM across all
        # batch tiles (no re-DMA per grid step).
        return pl.BlockSpec(a.shape, lambda i: (0, 0))

    kernel = functools.partial(
        _mlp_kernel,
        epilogue_dtype=jnp.bfloat16 if bf16_epilogue else jnp.float32)

    outT = pl.pallas_call(
        kernel,
        out_shape=jax.ShapeDtypeStruct((out_dim, B), jnp.float32),
        grid=grid,
        in_specs=[pl.BlockSpec((in_dim_aug, tm), lambda i: (0, i)),
                  resident(w1a), resident(w2a), resident(w3a),
                  resident(w4a), resident(w5a)],
        out_specs=pl.BlockSpec((out_dim, tm), lambda i: (0, i)),
        compiler_params=pltpu.CompilerParams(
            dimension_semantics=("parallel",)),
    )(xT, w1a, w2a, w3a, w4a, w5a)

    return outT.T                                   # (B, out_dim)


def init_linear(key, in_dim, out_dim):
    """nn.Linear default init: U(-1/sqrt(in), 1/sqrt(in)); PyTorch layout W=(out,in)."""
    kw, kb = jax.random.split(key)
    bound = 1.0 / jnp.sqrt(jnp.float32(in_dim))
    w = jax.random.uniform(kw, (out_dim, in_dim), jnp.float32, -bound, bound)
    b = jax.random.uniform(kb, (out_dim,), jnp.float32, -bound, bound)
    return w, b


def reference_forward(t, f, context, params):
    """Pure-JAX reference matching the PyTorch module (f32 end to end)."""
    h = jnp.concatenate((t, f, context), axis=1)
    for i, (w, b) in enumerate(params):
        h = h @ w.T + b
        if i < len(params) - 1:
            h = jnp.maximum(h, 0.0)
    return h


if __name__ == "__main__":
    # Small, module-consistent shapes (module default hidden_dim=200; smaller here).
    batch = 200                           # non-multiple of 128: exercises the masked last block
    t_dim, f_dim, ctx_dim = 1, 8, 7       # input_dim = 16
    hidden_dim = 32
    output_dim = 8

    key = jax.random.PRNGKey(0)
    k_t, k_f, k_c, k_p = jax.random.split(key, 4)

    t = jax.random.normal(k_t, (batch, t_dim), jnp.float32)
    f = jax.random.normal(k_f, (batch, f_dim), jnp.float32)
    context = jax.random.normal(k_c, (batch, ctx_dim), jnp.float32)

    dims = [t_dim + f_dim + ctx_dim, hidden_dim, hidden_dim, hidden_dim,
            hidden_dim, output_dim]
    pkeys = jax.random.split(k_p, len(dims) - 1)
    params = [init_linear(pk, dims[i], dims[i + 1]) for i, pk in enumerate(pkeys)]

    ref = reference_forward(t, f, context, params)

    # f32 matmul-input path: tight tolerance vs reference (bias folded into matmul
    # only reorders the f32 accumulation slightly).
    prep_f32 = prepare_params(params, use_bf16=False)
    out_f32 = jax.block_until_ready(
        context_to_sol_forward(t, f, context, prep_f32))
    assert out_f32.shape == (batch, output_dim)
    assert jnp.allclose(out_f32, ref, atol=1e-4, rtol=1e-4), "f32 mismatch vs reference"

    # bf16 MXU-input path (f32 accumulation): loose tolerance.
    prep_bf16 = prepare_params(params, use_bf16=True)
    out_bf16 = jax.block_until_ready(
        context_to_sol_forward(t, f, context, prep_bf16))
    assert out_bf16.shape == (batch, output_dim)
    assert jnp.allclose(out_bf16, ref, atol=5e-2, rtol=5e-2), "bf16 mismatch vs reference"

    print("KERNEL_OK")
</pallas_src>

<mosaic_0001>
module attributes {stable_mosaic.version = 11 : i64} {
  func.func @_mlp_kernel(%arg0: i32, %arg1: memref<17x128xf32, #tpu.memory_space<vmem>>, %arg2: memref<33x17xf32, #tpu.memory_space<vmem>>, %arg3: memref<33x33xf32, #tpu.memory_space<vmem>>, %arg4: memref<33x33xf32, #tpu.memory_space<vmem>>, %arg5: memref<33x33xf32, #tpu.memory_space<vmem>>, %arg6: memref<8x33xf32, #tpu.memory_space<vmem>>, %arg7: memref<8x128xf32, #tpu.memory_space<vmem>>) attributes {dimension_semantics = [#tpu.dimension_semantics<parallel>], iteration_bounds = array<i64: 2>, scalar_prefetch = 0 : i64, scratch_operands = 0 : i64, tpu.core_type = #tpu.core_type<tc>, window_params = [{transform_indices = @transform_0, window_bounds = array<i64: 17, 128>}, {pipeline_mode = #tpu.pipeline_mode<synchronous>, transform_indices = @transform_1, window_bounds = array<i64: 33, 17>}, {pipeline_mode = #tpu.pipeline_mode<synchronous>, transform_indices = @transform_2, window_bounds = array<i64: 33, 33>}, {pipeline_mode = #tpu.pipeline_mode<synchronous>, transform_indices = @transform_3, window_bounds = array<i64: 33, 33>}, {pipeline_mode = #tpu.pipeline_mode<synchronous>, transform_indices = @transform_4, window_bounds = array<i64: 33, 33>}, {pipeline_mode = #tpu.pipeline_mode<synchronous>, transform_indices = @transform_5, window_bounds = array<i64: 8, 33>}, {transform_indices = @transform_6, window_bounds = array<i64: 8, 128>}]} {
    %c0 = arith.constant 0 : index
    %c0_0 = arith.constant 0 : index
    %0 = vector.load %arg1[%c0, %c0_0] : memref<17x128xf32, #tpu.memory_space<vmem>>, vector<17x128xf32>
    %c0_1 = arith.constant 0 : index
    %c0_2 = arith.constant 0 : index
    %1 = vector.load %arg2[%c0_1, %c0_2] : memref<33x17xf32, #tpu.memory_space<vmem>>, vector<33x17xf32>
    %cst = arith.constant dense<0.000000e+00> : vector<33x128xf32>
    %2 = tpu.matmul %1, %0, %cst {dimension_numbers = #tpu.dot_dimension_numbers<[1], [0], [0], [1], [0, 0, 1, 1], [], []>} : vector<33x17xf32>, vector<17x128xf32>, vector<33x128xf32> -> vector<33x128xf32>
    %cst_3 = arith.constant 0.000000e+00 : f32
    %3 = vector.broadcast %cst_3 : f32 to vector<33x128xf32>
    %4 = arith.maximumf %2, %3 : vector<33x128xf32>
    %c0_4 = arith.constant 0 : index
    %c0_5 = arith.constant 0 : index
    %5 = vector.load %arg3[%c0_4, %c0_5] : memref<33x33xf32, #tpu.memory_space<vmem>>, vector<33x33xf32>
    %cst_6 = arith.constant dense<0.000000e+00> : vector<33x128xf32>
    %6 = tpu.matmul %5, %4, %cst_6 {dimension_numbers = #tpu.dot_dimension_numbers<[1], [0], [0], [1], [0, 0, 1, 1], [], []>} : vector<33x33xf32>, vector<33x128xf32>, vector<33x128xf32> -> vector<33x128xf32>
    %cst_7 = arith.constant 0.000000e+00 : f32
    %7 = vector.broadcast %cst_7 : f32 to vector<33x128xf32>
    %8 = arith.maximumf %6, %7 : vector<33x128xf32>
    %c0_8 = arith.constant 0 : index
    %c0_9 = arith.constant 0 : index
    %9 = vector.load %arg4[%c0_8, %c0_9] : memref<33x33xf32, #tpu.memory_space<vmem>>, vector<33x33xf32>
    %cst_10 = arith.constant dense<0.000000e+00> : vector<33x128xf32>
    %10 = tpu.matmul %9, %8, %cst_10 {dimension_numbers = #tpu.dot_dimension_numbers<[1], [0], [0], [1], [0, 0, 1, 1], [], []>} : vector<33x33xf32>, vector<33x128xf32>, vector<33x128xf32> -> vector<33x128xf32>
    %cst_11 = arith.constant 0.000000e+00 : f32
    %11 = vector.broadcast %cst_11 : f32 to vector<33x128xf32>
    %12 = arith.maximumf %10, %11 : vector<33x128xf32>
    %c0_12 = arith.constant 0 : index
    %c0_13 = arith.constant 0 : index
    %13 = vector.load %arg5[%c0_12, %c0_13] : memref<33x33xf32, #tpu.memory_space<vmem>>, vector<33x33xf32>
    %cst_14 = arith.constant dense<0.000000e+00> : vector<33x128xf32>
    %14 = tpu.matmul %13, %12, %cst_14 {dimension_numbers = #tpu.dot_dimension_numbers<[1], [0], [0], [1], [0, 0, 1, 1], [], []>} : vector<33x33xf32>, vector<33x128xf32>, vector<33x128xf32> -> vector<33x128xf32>
    %cst_15 = arith.constant 0.000000e+00 : f32
    %15 = vector.broadcast %cst_15 : f32 to vector<33x128xf32>
    %16 = arith.maximumf %14, %15 : vector<33x128xf32>
    %c0_16 = arith.constant 0 : index
    %c0_17 = arith.constant 0 : index
    %17 = vector.load %arg6[%c0_16, %c0_17] : memref<8x33xf32, #tpu.memory_space<vmem>>, vector<8x33xf32>
    %cst_18 = arith.constant dense<0.000000e+00> : vector<8x128xf32>
    %18 = tpu.matmul %17, %16, %cst_18 {dimension_numbers = #tpu.dot_dimension_numbers<[1], [0], [0], [1], [0, 0, 1, 1], [], []>} : vector<8x33xf32>, vector<33x128xf32>, vector<8x128xf32> -> vector<8x128xf32>
    %c0_19 = arith.constant 0 : index
    %c0_20 = arith.constant 0 : index
    %19 = vector.load %arg7[%c0_19, %c0_20] : memref<8x128xf32, #tpu.memory_space<vmem>>, vector<8x128xf32>
    tpu.vector_store %arg7[%c0_19, %c0_20], %18 {strides = array<i32>} : memref<8x128xf32, #tpu.memory_space<vmem>>, vector<8x128xf32>,
    return
  }
  func.func @transform_0(%arg0: i32) -> (i32, i32) {
    %c0_i32 = arith.constant 0 : i32
    %c0_i32_0 = arith.constant 0 : i32
    return %c0_i32, %arg0 : i32, i32
  }
  func.func @transform_1(%arg0: i32) -> (i32, i32) {
    %c0_i32 = arith.constant 0 : i32
    %c0_i32_0 = arith.constant 0 : i32
    %c0_i32_1 = arith.constant 0 : i32
    return %c0_i32, %c0_i32_0 : i32, i32
  }
  func.func @transform_2(%arg0: i32) -> (i32, i32) {
    %c0_i32 = arith.constant 0 : i32
    %c0_i32_0 = arith.constant 0 : i32
    %c0_i32_1 = arith.constant 0 : i32
    return %c0_i32, %c0_i32_0 : i32, i32
  }
  func.func @transform_3(%arg0: i32) -> (i32, i32) {
    %c0_i32 = arith.constant 0 : i32
    %c0_i32_0 = arith.constant 0 : i32
    %c0_i32_1 = arith.constant 0 : i32
    return %c0_i32, %c0_i32_0 : i32, i32
  }
  func.func @transform_4(%arg0: i32) -> (i32, i32) {
    %c0_i32 = arith.constant 0 : i32
    %c0_i32_0 = arith.constant 0 : i32
    %c0_i32_1 = arith.constant 0 : i32
    return %c0_i32, %c0_i32_0 : i32, i32
  }
  func.func @transform_5(%arg0: i32) -> (i32, i32) {
    %c0_i32 = arith.constant 0 : i32
    %c0_i32_0 = arith.constant 0 : i32
    %c0_i32_1 = arith.constant 0 : i32
    return %c0_i32, %c0_i32_0 : i32, i32
  }
  func.func @transform_6(%arg0: i32) -> (i32, i32) {
    %c0_i32 = arith.constant 0 : i32
    %c0_i32_0 = arith.constant 0 : i32
    return %c0_i32, %arg0 : i32, i32
  }
}

</mosaic_0001>

<bundles_post_ra>
// kernel: context_to_sol_forward.1
= control target key start
LH: loop header
LB: loop body
LE: loop exit
PB: predicated region body
PF: predicated region fallthrough
CT: control target
= control target key end

     0   :  { %11 = vsyncpa [#allocation4], 0  ;;  %s1523_s0 = inlined_call_operand.vmem [shape: f32[17,200], index: 0, kind: input, shape index: {}]   ;;  %s1524_s1 = inlined_call_operand.vmem [shape: f32[33,17], index: 1, kind: input, shape index: {}]   ;;  %s1525_s2 = inlined_call_operand.vmem [shape: f32[33,33], index: 2, kind: input, shape index: {}]   ;;  %s1526_s3 = inlined_call_operand.vmem [shape: f32[33,33], index: 3, kind: input, shape index: {}]   ;;  %s1527_s4 = inlined_call_operand.vmem [shape: f32[33,33], index: 4, kind: input, shape index: {}]   ;;  %s1528_s5 = inlined_call_operand.vmem [shape: f32[8,33], index: 5, kind: input, shape index: {}]   ;;  %s1529_s6 = inlined_call_operand.hbm [shape: f32[8,200], index: 6, kind: output, shape index: {}]  }
   0x1   :  { %13 = vsyncpa [#allocation4 + $0x1], 0  ;;  %s1260_s21 = smov 0   ;;  %s1262_s22 = smov 0  }
   0x2   :  { %s1264_s23 = smov 0   ;;  %s1266_s24 = smov 0  }
   0x3 LB: > { %s927_s25 = sadd.s32 4294967295, %s1220_s24   ;;  %s928_s26 = sadd.s32 4294967294, %s1220_s24   ;;  %s1220_s24 = sphi %s1266_s24, %s1535_s24   ;;  %s1216_s23 = sphi %s1264_s23, %s1534_s23   ;;  %s1212_s22 = sphi %s1262_s22, %s1533_s22   ;;  %s1208_s21 = sphi %s1260_s21, %s1532_s21  }
   0x4   : > { %s1283_s27 = sadd.s32 1, %s1220_s24   ;;  %s26_s28 = sadd.s32 1, %s1216_s23 }
   0x5   : > { %s23_s29 = ssub.s32 %s1220_s24, %s1283_s27  ;;  %p33_p0 = scmp.ne.s32.totalorder %s1216_s23, %s1212_s22 }
   0x6   : > { %p24_p1 = scmp.eq.s32.totalorder %s23_s29, 0  ;;  %p34_p2 = scmp.eq.s32.totalorder %s1220_s24, 0 }
   0x7   : > { %p168_p3 = scmp.eq.s32.totalorder %s927_s25, 1  ;;  %p173_p4 = scmp.ne.s32.totalorder %s1212_s22, %s1208_s21 }
   0x8   : > { %s1296_s30 = scalar_select %p24_p1, %s1216_s23, %s26_s28  }
   0x9   : > { %p35_p5 = por %p34_p2, %p33_p0  ;;  %p1298_p6 = por %p168_p3, %p33_p0 }
   0xa   : > { %p174_p7 = scmp.eq.s32.totalorder %s928_s26, 1  ;;  %p930_p9 = scmp.ge.s32.totalorder %s1220_s24, 2 }
   0xc   : > { %p1302_p8 = por %p174_p7, %p173_p4  ;;  %205 = sbr.rel (%p930_p9) target bundleno = 23 (0x17), region = 36 }
  0x11   : > { %208 = sbr.rel (!%p35_p5) target bundleno = 23 (0x17), region = 40  ;;  %s210_s9 = sand.u32 (%p35_p5), 1, %s1216_s23  }
  0x12   : > { %s931_s10 = sshll.u32 (%p35_p5), %s1220_s24, 3  ;;  %s1117_s11 = smul.u32 (%p35_p5), 24, %s210_s9 }
  0x13   : > { %s214_s14 = scalar_lea.vmem (%p35_p5), %s1523_s0, %s931_s10 }
  0x14   : > { %v247_v0 = vld [vmem:[%s214_s14] sm:$0xff] (%p35_p5)  ;;  %v249_v1 = vld [vmem:[%s214_s14 + $0x10] sm:$0xff] (%p35_p5)  ;;  %s212_s15 = scalar_lea.vmem (%p35_p5), [#allocation2], %s1117_s11 }
  0x15   : > { %v251_v2 = vld [vmem:[%s214_s14 + $0x20] sm:$0xff] (%p35_p5)  ;;  %248 = vst [vmem:[%s212_s15] sm:$0xff] (%p35_p5), %v247_v0  ;;  %250 = vst [vmem:[%s212_s15 + $0x8] sm:$0xff] (%p35_p5), %v249_v1 }
  0x16   : > { %252 = vst [vmem:[%s212_s15 + $0x10] sm:$0xff] %v251_v2 }
  0x17 PF: > { %p932_p10 = scmp.ge.s32.totalorder %s1220_s24, 1  ;;  %p257_p11 = scmp.lt.s32.totalorder %s1220_s24, 3 }
  0x19   : > { %p258_p12 = pnand %p932_p10, %p257_p11 }
  0x1a   : > { %s1317_s16 = sand.u32 (!%p258_p12), 1, %s1212_s22   ;;  %s961_s28 = sshll.u32 (!%p258_p12), %s927_s25, 7 }
  0x1b   : > { %261 = sbr.rel (%p258_p12) target bundleno = 1127 (0x467), region = 78  ;;  %s933_s19 = sshll.u32 (!%p258_p12), %s1317_s16, 3 }
  0x1c   : > { %s1118_s17 = smul.u32 (!%p258_p12), 24, %s1317_s16  ;;  %s292_s20 = scalar_lea.vmem (!%p258_p12), [#allocation3], %s933_s19 }
  0x1d   : > { %s863_s26 = sshll.u32 (!%p258_p12), %s292_s20, 4  ;;  %s1482_s10 = scalar_lea.hbm (!%p258_p12), %s1529_s6, %s961_s28  ;;  %s1477_s26 = int_to_ptr.vmem [resolvable:$true] %s863_s26 }
  0x1e   : > { %s266_s18 = scalar_lea.vmem (!%p258_p12), [#allocation2], %s1118_s17  ;;  %s850_s11 = scalar_lea.sflag (!%p258_p12), [#allocation4], %s1317_s16 }
  0x1f   : > { %s1160_s12 = scalar_lea.vmem (!%p258_p12), %s1477_s26, 128  ;;  %s1224_s25 = smov (!%p258_p12), [#allocation3]  }
  0x20   : > { %v1222_v3 = vmov 0.0   ;;  %vm1223_vm0 = vmmov 0   ;;  %vm317_vm1 = vcmask 1040384   ;;  %v295_v4 = vld [vmem:[%s266_s18 + $0x10] sm:$0x1]  ;;  %v294_v5 = vld [vmem:[%s266_s18 + $0x8] sm:$0xff]  ;;  %p1161_p13 = scmp.ne.s32.totalorder %s1477_s26, %s1160_s12 }
  0x21   : > { %1008 = vmatprep.subr.mxu0 %v1222_v3  ;;  %1014 = vmatprep.mubr.msk.f32.mxu0 %vm1223_vm0, %v1222_v3  ;;  %v293_v6 = vld [vmem:[%s266_s18] sm:$0xff]  ;;  %vm301_vm2 = vcmask 138240   ;;  %v297_v8 = vld [vmem:[%s1524_s1 + $0x8] sm:$0xff]  ;;  %v298_v9 = vld [vmem:[%s1524_s1 + $0x10] sm:$0xff]  ;;  %vm421_vm3 = vcmask 269312   ;;  %s1164_s13 = sshll.u32 %s1224_s25, 4  ;;  %s1165_s13 = int_to_ptr.vmem [resolvable:$false] %s1164_s13 }
  0x22   : > { %1029 = vmatprep.subr.mxu1 %v1222_v3  ;;  %1039 = vmatprep.mubr.msk.f32.mxu1 %vm1223_vm0, %v1222_v3  ;;  %v296_v7 = vld [vmem:[%s1524_s1] sm:$0xff]  ;;  %v299_v10 = vld [vmem:[%s1524_s1 + $0x18] sm:$0xff]  ;;  %v417_v28 = vld [vmem:[%s1525_s2 + $0x8] sm:$0xff]  ;;  %p1162_p0 = pnand %p1161_p13, %p1298_p6  ;;  %s1166_s14 = scalar_lea.vmem %s1165_s13, 256 }
  0x23   : > { %1009 = vmatpush3.msk.msra.mxu0 %vm317_vm1, %v295_v4  ;;  %v300_v11 = vld [vmem:[%s1524_s1 + $0x20] sm:$0x1]  ;;  %v418_v29 = vld [vmem:[%s1525_s2 + $0x10] sm:$0xff]  ;;  %v419_v30 = vld [vmem:[%s1525_s2 + $0x18] sm:$0xff]  ;;  %p1167_p2 = scmp.lt.s32.totalorder %s1477_s26, %s1165_s13  ;;  %p1168_p3 = scmp.lt.s32.totalorder %s1166_s14, %s1160_s12 }
  0x24   : > { %1010 = vmatprep.subr.mxu0 %v1222_v3  ;;  %v416_v27 = vld [vmem:[%s1525_s2] sm:$0xff]  ;;  %v536_v48 = vld [vmem:[%s1526_s3 + $0x8] sm:$0xff]  ;;  %v537_v49 = vld [vmem:[%s1526_s3 + $0x10] sm:$0xff]  ;;  %p1163_p1 = pneg %p1162_p0 }
  0x25   : > { %1011 = vmatpush3.msra.mxu0 %v294_v5  ;;  %v420_v31 = vld [vmem:[%s1525_s2 + $0x20] sm:$0x1]  ;;  %v538_v50 = vld [vmem:[%s1526_s3 + $0x18] sm:$0xff]  ;;  %v654_v5 = vld [vmem:[%s1527_s4 + $0x8] sm:$0xff]  ;;  %p1169_p4 = por %p1168_p3, %p1167_p2 }
  0x26   : > { %1012 = vmatprep.subr.mxu0 %v1222_v3  ;;  %v535_v47 = vld [vmem:[%s1526_s3] sm:$0xff] }
  0x27   : > { %1013 = vmatpush3.msra.mxu0 %v293_v6  ;;  %v539_v51 = vld [vmem:[%s1526_s3 + $0x20] sm:$0x1]  ;;  %v655_v6 = vld [vmem:[%s1527_s4 + $0x10] sm:$0xff]  ;;  %p1170_p5 = pnand %p1169_p4, %p1163_p1 }
  0x28   : > { %1015 = vmatmul.mubr.msk.f32.vlgmr.msra.gmra.mxu0 %vm301_vm2, %v296_v7  ;;  %1054 = vmatprep.subr.mxu0 %v1222_v3  ;;  %v653_v4 = vld [vmem:[%s1527_s4] sm:$0xff]  ;;  %v656_v7 = vld [vmem:[%s1527_s4 + $0x18] sm:$0xff] }
  0x29   : > { %1017 = vmatprep.mubr.msk.f32.mxu0 %vm1223_vm0, %v1222_v3 }
  0x2c   : > { %1018 = vmatmul.mubr.msk.f32.gmra.mxu0 %vm301_vm2, %v297_v8  ;;  %v657_v8 = vld [vmem:[%s1527_s4 + $0x20] sm:$0x1] }
  0x2d   : > { %1020 = vmatprep.mubr.msk.f32.mxu0 %vm1223_vm0, %v1222_v3 }
  0x30   : > { %1021 = vmatmul.mubr.msk.f32.gmra.mxu0 %vm301_vm2, %v298_v9 }
  0x31   : > { %1023 = vmatprep.mubr.msk.f32.mxu0 %vm1223_vm0, %v1222_v3 }
  0x34   : > { %1024 = vmatmul.mubr.msk.f32.gmra.mxu0 %vm301_vm2, %v299_v10 }
  0x35   : > { %1026 = vmatprep.mubr.msk.f32.mxu0 %vm1223_vm0, %v1222_v3 }
  0x38   : > { %1027 = vmatmul.mubr.msk.f32.gmra.mxu0 %vm301_vm2, %v300_v11 }
  0x39   : > { %1064 = vmatprep.mubr.msk.f32.mxu0 %vm1223_vm0, %v1222_v3 }
  0xe8   : > { %v387_v12 = vpop.f32.mrf.mxu0 }
  0xe9   : > { %v411_v26 = vmax.f32 %v387_v12, 0.0 }
  0xea   : > { %v1016_v13 = vpop.f32.mrf.mxu0 }
  0xec   : > { %v392_v14 = vpop.f32.mrf.mxu0 }
  0xed   : > { %v412_v25 = vmax.f32 %v392_v14, 0.0 }
  0xee   : > { %v1019_v15 = vpop.f32.mrf.mxu0 }
  0xf0   : > { %v397_v16 = vpop.f32.mrf.mxu0 }
  0xf1   : > { %v413_v24 = vmax.f32 %v397_v16, 0.0 }
  0xf2   : > { %v1022_v17 = vpop.f32.mrf.mxu0 }
  0xf4   : > { %v402_v18 = vpop.f32.mrf.mxu0 }
  0xf5   : > { %v414_v23 = vmax.f32 %v402_v18, 0.0 }
  0xf6   : > { %v1025_v19 = vpop.f32.mrf.mxu0 }
  0xf8   : > { %v407_v20 = vpop.f32.mrf.mxu0 }
  0xf9   : > { %v415_v21 = vmax.f32 %v407_v20, 0.0 }
  0xfa   : > { %v1028_v22 = vpop.f32.mrf.mxu0 }
  0xfb   : > { %1030 = vmatpush3.msk.msra.mxu1 %vm317_vm1, %v415_v21 }
  0xfc   : > { %1031 = vmatprep.subr.mxu1 %v1222_v3 }
  0xfd   : > { %1032 = vmatpush3.msra.mxu1 %v414_v23 }
  0xfe   : > { %1033 = vmatprep.subr.mxu1 %v1222_v3 }
  0xff   : > { %1034 = vmatpush3.msra.mxu1 %v413_v24  ;;  %v771_v24 = vld [vmem:[%s1528_s5] sm:$0xff] }
 0x100   : > { %1035 = vmatprep.subr.mxu1 %v1222_v3 }
 0x101   : > { %1036 = vmatpush3.msra.mxu1 %v412_v25 }
 0x102   : > { %1037 = vmatprep.subr.mxu1 %v1222_v3 }
 0x103   : > { %1038 = vmatpush3.msra.mxu1 %v411_v26 }
 0x104   : > { %1040 = vmatmul.mubr.msk.f32.vlgmr.msra.gmra.mxu1 %vm421_vm3, %v416_v27  ;;  %1079 = vmatprep.subr.mxu1 %v1222_v3 }
 0x105   : > { %1042 = vmatprep.mubr.msk.f32.mxu1 %vm1223_vm0, %v1222_v3 }
 0x108   : > { %1043 = vmatmul.mubr.msk.f32.gmra.mxu1 %vm421_vm3, %v417_v28 }
 0x109   : > { %1045 = vmatprep.mubr.msk.f32.mxu1 %vm1223_vm0, %v1222_v3 }
 0x10c   : > { %1046 = vmatmul.mubr.msk.f32.gmra.mxu1 %vm421_vm3, %v418_v29 }
 0x10d   : > { %1048 = vmatprep.mubr.msk.f32.mxu1 %vm1223_vm0, %v1222_v3 }
 0x110   : > { %1049 = vmatmul.mubr.msk.f32.gmra.mxu1 %vm421_vm3, %v419_v30 }
 0x111   : > { %1051 = vmatprep.mubr.msk.f32.mxu1 %vm1223_vm0, %v1222_v3 }
 0x114   : > { %1052 = vmatmul.mubr.msk.f32.gmra.mxu1 %vm421_vm3, %v420_v31 }
 0x115   : > { %1089 = vmatprep.mubr.msk.f32.mxu1 %vm1223_vm0, %v1222_v3 }
 0x1c4   : > { %v506_v32 = vpop.f32.mrf.mxu1 }
 0x1c5   : > { %v530_v46 = vmax.f32 %v506_v32, 0.0 }
 0x1c6   : > { %v1041_v33 = vpop.f32.mrf.mxu1 }
 0x1c8   : > { %v511_v34 = vpop.f32.mrf.mxu1 }
 0x1c9   : > { %v531_v45 = vmax.f32 %v511_v34, 0.0 }
 0x1ca   : > { %v1044_v35 = vpop.f32.mrf.mxu1 }
 0x1cc   : > { %v516_v36 = vpop.f32.mrf.mxu1 }
 0x1cd   : > { %v532_v44 = vmax.f32 %v516_v36, 0.0 }
 0x1ce   : > { %v1047_v37 = vpop.f32.mrf.mxu1 }
 0x1d0   : > { %v521_v38 = vpop.f32.mrf.mxu1 }
 0x1d1   : > { %v533_v43 = vmax.f32 %v521_v38, 0.0 }
 0x1d2   : > { %v1050_v39 = vpop.f32.mrf.mxu1 }
 0x1d4   : > { %v526_v40 = vpop.f32.mrf.mxu1 }
 0x1d5   : > { %v534_v41 = vmax.f32 %v526_v40, 0.0 }
 0x1d6   : > { %v1053_v42 = vpop.f32.mrf.mxu1 }
 0x1d7   : > { %1055 = vmatpush3.msk.msra.mxu0 %vm317_vm1, %v534_v41 }
 0x1d8   : > { %1056 = vmatprep.subr.mxu0 %v1222_v3 }
 0x1d9   : > { %1057 = vmatpush3.msra.mxu0 %v533_v43 }
 0x1da   : > { %1058 = vmatprep.subr.mxu0 %v1222_v3 }
 0x1db   : > { %1059 = vmatpush3.msra.mxu0 %v532_v44 }
 0x1dc   : > { %1060 = vmatprep.subr.mxu0 %v1222_v3 }
 0x1dd   : > { %1061 = vmatpush3.msra.mxu0 %v531_v45 }
 0x1de   : > { %1062 = vmatprep.subr.mxu0 %v1222_v3 }
 0x1df   : > { %1063 = vmatpush3.msra.mxu0 %v530_v46 }
 0x1e0   : > { %1065 = vmatmul.mubr.msk.f32.vlgmr.msra.gmra.mxu0 %vm421_vm3, %v535_v47  ;;  %1104 = vmatprep.subr.mxu0 %v1222_v3 }
 0x1e1   : > { %1067 = vmatprep.mubr.msk.f32.mxu0 %vm1223_vm0, %v1222_v3 }
 0x1e4   : > { %1068 = vmatmul.mubr.msk.f32.gmra.mxu0 %vm421_vm3, %v536_v48 }
 0x1e5   : > { %1070 = vmatprep.mubr.msk.f32.mxu0 %vm1223_vm0, %v1222_v3 }
 0x1e8   : > { %1071 = vmatmul.mubr.msk.f32.gmra.mxu0 %vm421_vm3, %v537_v49 }
 0x1e9   : > { %1073 = vmatprep.mubr.msk.f32.mxu0 %vm1223_vm0, %v1222_v3 }
 0x1ec   : > { %1074 = vmatmul.mubr.msk.f32.gmra.mxu0 %vm421_vm3, %v538_v50 }
 0x1ed   : > { %1076 = vmatprep.mubr.msk.f32.mxu0 %vm1223_vm0, %v1222_v3 }
 0x1f0   : > { %1077 = vmatmul.mubr.msk.f32.gmra.mxu0 %vm421_vm3, %v539_v51 }
 0x1f1   : > { %1114 = vmatprep.mubr.msk.f32.mxu0 %vm1223_vm0, %v1222_v3 }
 0x2a0   : > { %v624_v52 = vpop.f32.mrf.mxu0 }
 0x2a1   : > { %v648_v2 = vmax.f32 %v624_v52, 0.0 }
 0x2a2   : > { %v1066_v53 = vpop.f32.mrf.mxu0 }
 0x2a4   : > { %v629_v54 = vpop.f32.mrf.mxu0 }
 0x2a5   : > { %v649_v1 = vmax.f32 %v629_v54, 0.0 }
 0x2a6   : > { %v1069_v55 = vpop.f32.mrf.mxu0 }
 0x2a8   : > { %v634_v56 = vpop.f32.mrf.mxu0 }
 0x2a9   : > { %v650_v0 = vmax.f32 %v634_v56, 0.0 }
 0x2aa   : > { %v1072_v57 = vpop.f32.mrf.mxu0 }
 0x2ac   : > { %v639_v58 = vpop.f32.mrf.mxu0 }
 0x2ad   : > { %v651_v63 = vmax.f32 %v639_v58, 0.0 }
 0x2ae   : > { %v1075_v59 = vpop.f32.mrf.mxu0 }
 0x2b0   : > { %v644_v60 = vpop.f32.mrf.mxu0 }
 0x2b1   : > { %v652_v61 = vmax.f32 %v644_v60, 0.0 }
 0x2b2   : > { %v1078_v62 = vpop.f32.mrf.mxu0 }
 0x2b3   : > { %1080 = vmatpush3.msk.msra.mxu1 %vm317_vm1, %v652_v61 }
 0x2b4   : > { %1081 = vmatprep.subr.mxu1 %v1222_v3 }
 0x2b5   : > { %1082 = vmatpush3.msra.mxu1 %v651_v63 }
 0x2b6   : > { %1083 = vmatprep.subr.mxu1 %v1222_v3 }
 0x2b7   : > { %1084 = vmatpush3.msra.mxu1 %v650_v0 }
 0x2b8   : > { %1085 = vmatprep.subr.mxu1 %v1222_v3 }
 0x2b9   : > { %1086 = vmatpush3.msra.mxu1 %v649_v1 }
 0x2ba   : > { %1087 = vmatprep.subr.mxu1 %v1222_v3 }
 0x2bb   : > { %1088 = vmatpush3.msra.mxu1 %v648_v2 }
 0x2bc   : > { %1090 = vmatmul.mubr.msk.f32.vlgmr.msra.gmra.mxu1 %vm421_vm3, %v653_v4 }
 0x2bd   : > { %1092 = vmatprep.mubr.msk.f32.mxu1 %vm1223_vm0, %v1222_v3 }
 0x2c0   : > { %1093 = vmatmul.mubr.msk.f32.gmra.mxu1 %vm421_vm3, %v654_v5 }
 0x2c1   : > { %1095 = vmatprep.mubr.msk.f32.mxu1 %vm1223_vm0, %v1222_v3 }
 0x2c4   : > { %1096 = vmatmul.mubr.msk.f32.gmra.mxu1 %vm421_vm3, %v655_v6 }
 0x2c5   : > { %1098 = vmatprep.mubr.msk.f32.mxu1 %vm1223_vm0, %v1222_v3 }
 0x2c8   : > { %1099 = vmatmul.mubr.msk.f32.gmra.mxu1 %vm421_vm3, %v656_v7 }
 0x2c9   : > { %1101 = vmatprep.mubr.msk.f32.mxu1 %vm1223_vm0, %v1222_v3 }
 0x2cc   : > { %1102 = vmatmul.mubr.msk.f32.gmra.mxu1 %vm421_vm3, %v657_v8 }
 0x37c   : > { %v742_v9 = vpop.f32.mrf.mxu1 }
 0x37d   : > { %v766_v23 = vmax.f32 %v742_v9, 0.0 }
 0x37e   : > { %v1091_v10 = vpop.f32.mrf.mxu1 }
 0x380   : > { %v747_v11 = vpop.f32.mrf.mxu1 }
 0x381   : > { %v767_v22 = vmax.f32 %v747_v11, 0.0 }
 0x382   : > { %v1094_v12 = vpop.f32.mrf.mxu1 }
 0x384   : > { %v752_v13 = vpop.f32.mrf.mxu1 }
 0x385   : > { %v768_v21 = vmax.f32 %v752_v13, 0.0 }
 0x386   : > { %v1097_v14 = vpop.f32.mrf.mxu1 }
 0x388   : > { %v757_v15 = vpop.f32.mrf.mxu1 }
 0x389   : > { %v769_v20 = vmax.f32 %v757_v15, 0.0 }
 0x38a   : > { %v1100_v16 = vpop.f32.mrf.mxu1 }
 0x38c   : > { %v762_v17 = vpop.f32.mrf.mxu1 }
 0x38d   : > { %v770_v18 = vmax.f32 %v762_v17, 0.0 }
 0x38e   : > { %v1103_v19 = vpop.f32.mrf.mxu1 }
 0x38f   : > { %1105 = vmatpush3.msk.msra.mxu0 %vm317_vm1, %v770_v18 }
 0x390   : > { %1106 = vmatprep.subr.mxu0 %v1222_v3 }
 0x391   : > { %1107 = vmatpush3.msra.mxu0 %v769_v20 }
 0x392   : > { %1108 = vmatprep.subr.mxu0 %v1222_v3 }
 0x393   : > { %1109 = vmatpush3.msra.mxu0 %v768_v21 }
 0x394   : > { %1110 = vmatprep.subr.mxu0 %v1222_v3 }
 0x395   : > { %1111 = vmatpush3.msra.mxu0 %v767_v22 }
 0x396   : > { %1112 = vmatprep.subr.mxu0 %v1222_v3 }
 0x397   : > { %1113 = vmatpush3.msra.mxu0 %v766_v23 }
 0x398   : > { %1115 = vmatmul.mubr.msk.f32.vlgmr.msra.gmra.mxu0 %vm421_vm3, %v771_v24 }
 0x458   : > { %v844_v25 = vpop.f32.mrf.mxu0 }
 0x459   : > { %848 = vst [vmem:[%s292_s20] sm:$0xff] %v844_v25 }
 0x45a   : > { %v1116_v3 = vpop.f32.mrf.mxu0 }
 0x45b   : > { %1173 = shalt.err (!%p1170_p5)
}
 0x45c   : > { %s1174_s15 = scalar_lea.hbm %s1482_s10, 128  ;;  %s1178_s18 = scalar_lea.hbm %s1529_s6, 256 }
 0x45d   : > { %p1175_p7 = scmp.ne.s32.totalorder %s1482_s10, %s1174_s15  ;;  %p1179_p12 = scmp.lt.s32.totalorder %s1482_s10, %s1529_s6 }
 0x45e   : > { %p1180_p13 = scmp.lt.s32.totalorder %s1178_s18, %s1174_s15 }
 0x45f   : > { %p1176_p10 = pnand %p1175_p7, %p1298_p6 }
 0x460   : > { %p1181_p0 = por %p1180_p13, %p1179_p12 }
 0x461   : > { %p1177_p11 = pneg %p1176_p10 }
 0x463   : > { %p1182_p1 = pnand %p1181_p0, %p1177_p11 }
 0x465   : > { %1185 = shalt.err (!%p1182_p1)
}
 0x466   : > { %1119 = dma.vmem_to_hbm [thread:$0]  (%p1298_p6), %s1477_s26, 128, %s1482_s10, %s850_s11  }
 0x467 PF: > { %s875_s28 = sand.u32 1, %s1208_s21   ;;  %p1122_p2 = pnand %p930_p9, %p1302_p8 }
 0x468   : > { %s876_s29 = scalar_lea.sflag [#allocation4], %s875_s28 }
 0x469   : > { %p1123_p3 = pneg %p1122_p2 }
 0x46b   : > { %1203 = dma.done.wait (%p1123_p3), %s876_s29, 128  }
 0x46c   : > { %1205 = vsyncadd (%p1123_p3), %s876_s29, 4294967168  ;;  %p16_p4 = scmp.ge.s32.totalorder %s1283_s27, 4   ;;  %s1532_s21 = smov %s1212_s22 }
 0x46d   : > { %s1533_s22 = smov %s1216_s23  ;;  %s1534_s23 = smov %s1296_s30 }
 0x46e   : > { %s1535_s24 = smov %s1283_s27  ;;  %18 = sbr.rel (!%p16_p4) target bundleno = 3 (0x3), region = 122 }
 0x473   :  { %881 = vsyncpa [#allocation4], 1 }
 0x474   :  { %883 = vsyncpa [#allocation4 + $0x1], 1 }

</bundles_post_ra>
